<compile_context>
chip_gen: v7x
topology: tpu7x:2x2x1
jax: 0.10.0
libtpu: 0.0.40
codegen_flags: <defaults>
</compile_context>

<pallas_src>
import jax
import jax.numpy as jnp
from jax.experimental import pallas as pl
from jax.experimental.pallas import tpu as pltpu

D_IN = 784
H1, H1_PAD = 400, 512
H2, H2_PAD = 100, 128
D_OUT, D_OUT_PAD = 10, 128

NEG_MASK = -1e30  # finite "minus infinity" baked into padded logit lanes


def _round_up(n, m):
    return (n + m - 1) // m * m


def dnn_kernel(x_ref, w1_ref, b1_ref, w2_ref, b2_ref, w3_ref, b3_ref, o_ref):
    # ---- fc1: Linear(784, 400) + (Dropout p=0.1: identity at inference) + ReLU
    # TODO(synk): training-mode dropout would use pltpu.prng_seed /
    # pltpu.stateful_bernoulli; eval-mode forward is identity so it is omitted.
    x = x_ref[...].astype(jnp.bfloat16)           # in-kernel cast (no extra HBM pass)
    h1 = jnp.dot(x, w1_ref[...], preferred_element_type=jnp.float32)
    h1 = jnp.maximum(h1 + b1_ref[...], 0.0).astype(jnp.bfloat16)  # fused bf16 store

    # ---- fc2: Linear(400, 100) + ReLU (zero-padded columns stay exactly 0) ----
    h2 = jnp.dot(h1, w2_ref[...], preferred_element_type=jnp.float32)
    h2 = jnp.maximum(h2 + b2_ref[...], 0.0).astype(jnp.bfloat16)

    # ---- fc3: Linear(100, 10), output padded to 128 lanes.
    # b3's padded lanes carry -1e30, so the softmax mask is baked into the bias.
    z = jnp.dot(h2, w3_ref[...], preferred_element_type=jnp.float32) + b3_ref[...]

    # ---- LogSoftmax (f32). Padded lanes ~ -1e30: exp underflows to 0, they
    # contribute nothing to the reduction, and the wrapper slices them away.
    m = jnp.max(z, axis=-1, keepdims=True)
    shifted = z - m
    lse = jnp.log(jnp.sum(jnp.exp(shifted), axis=-1, keepdims=True))
    o_ref[...] = (shifted - lse).astype(o_ref.dtype)


def prepare_params(params):
    """Zero-pad params to lane-aligned shapes; weights -> bf16, biases -> f32."""
    w1, b1, w2, b2, w3, b3 = params

    def pad2(a, rows, cols, fill=0.0):
        buf = jnp.full((rows, cols), fill, a.dtype)
        return buf.at[:a.shape[0], :a.shape[1]].set(a)

    w1p = pad2(w1, D_IN, H1_PAD).astype(jnp.bfloat16)
    b1p = pad2(b1.reshape(1, -1), 1, H1_PAD).astype(jnp.float32)
    w2p = pad2(w2, H1_PAD, H2_PAD).astype(jnp.bfloat16)
    b2p = pad2(b2.reshape(1, -1), 1, H2_PAD).astype(jnp.float32)
    w3p = pad2(w3, H2_PAD, D_OUT_PAD).astype(jnp.bfloat16)
    # Bake the logit mask into the bias: padded lanes get -1e30 (finite, so no
    # inf-inf NaN risk) and the kernel needs no iota/where masking.
    b3p = pad2(b3.reshape(1, -1).astype(jnp.float32), 1, D_OUT_PAD, fill=NEG_MASK)
    return (w1p, b1p, w2p, b2p, w3p, b3p)


def dnn_forward(x, padded_params, *, tb=1024):
    """x: anything flattening to (-1, 784), e.g. (B, 1, 28, 28). Returns (B, 10)."""
    w1, b1, w2, b2, w3, b3 = padded_params
    x2d = x.reshape(-1, D_IN)          # native dtype; cast to bf16 inside the kernel
    B = x2d.shape[0]

    # Batch tile: multiple of 8 sublanes; don't over-tile tiny batches, and
    # split into >= 2 grid steps when possible so v7x's two TensorCores both
    # get work via the "parallel" batch axis. tb=1024 fits comfortably under
    # the 48 MiB VMEM limit on v5e/v6e/v7x; v6e tolerates tb=2048 as well.
    tb = max(8, min(tb, _round_up(B, 8)))
    if pl.cdiv(B, tb) < 2 and B > 8:
        tb = max(8, _round_up(pl.cdiv(B, 2), 8))
    grid = (pl.cdiv(B, tb),)           # partial last block handled by masking

    def const(shape):
        # Constant-index blocks: DMA'd once, single-buffered to save VMEM.
        return pl.BlockSpec(shape, lambda i: (0, 0), pipeline_mode=pl.Buffered(1))

    out = pl.pallas_call(
        dnn_kernel,
        out_shape=jax.ShapeDtypeStruct((B, D_OUT_PAD), jnp.float32),
        grid=grid,
        in_specs=[
            pl.BlockSpec((tb, D_IN), lambda i: (i, 0)),   # streamed batch tile
            const((D_IN, H1_PAD)), const((1, H1_PAD)),    # resident weights/biases
            const((H1_PAD, H2_PAD)), const((1, H2_PAD)),
            const((H2_PAD, D_OUT_PAD)), const((1, D_OUT_PAD)),
        ],
        out_specs=pl.BlockSpec((tb, D_OUT_PAD), lambda i: (i, 0)),
        compiler_params=pltpu.CompilerParams(
            dimension_semantics=("parallel",),
            vmem_limit_bytes=48 * 1024 * 1024,
        ),
    )(x2d, w1, b1, w2, b2, w3, b3)

    # Lane slice back to the module's (B, 10) contract (padded lanes discarded).
    return out[:, :D_OUT]


def init_params(key):
    """Deterministic init mimicking nn.Linear's uniform(-1/sqrt(fan_in), ...)."""
    def linear(k, fan_in, fan_out):
        kw, kb = jax.random.split(k)
        bound = 1.0 / jnp.sqrt(jnp.float32(fan_in))
        w = jax.random.uniform(kw, (fan_in, fan_out), jnp.float32, -bound, bound)
        b = jax.random.uniform(kb, (1, fan_out), jnp.float32, -bound, bound)
        return w, b

    k1, k2, k3 = jax.random.split(key, 3)
    w1, b1 = linear(k1, D_IN, H1)
    w2, b2 = linear(k2, H1, H2)
    w3, b3 = linear(k3, H2, D_OUT)
    return (w1, b1, w2, b2, w3, b3)


def _reference(x, params):
    w1, b1, w2, b2, w3, b3 = params
    h = x.reshape(-1, D_IN).astype(jnp.float32)
    h = jnp.maximum(h @ w1 + b1, 0.0)
    h = jnp.maximum(h @ w2 + b2, 0.0)
    z = h @ w3 + b3
    return jax.nn.log_softmax(z, axis=-1)


if __name__ == "__main__":
    key = jax.random.PRNGKey(0)
    k_params, k_x = jax.random.split(key)
    params = init_params(k_params)
    padded = prepare_params(params)

    # Small MNIST-like batch: (B=8, C=1, H=28, W=28) -> view(-1, 784)
    x = jax.random.normal(k_x, (8, 1, 28, 28), jnp.float32)

    out = dnn_forward(x, padded)
    jax.block_until_ready(out)

    assert out.shape == (8, D_OUT), out.shape
    # log-softmax rows must exp-sum to ~1 (computed & stored in f32)
    row_sums = jnp.sum(jnp.exp(out), axis=-1)
    assert jnp.allclose(row_sums, 1.0, atol=1e-4), row_sums
    # loose check against an f32 reference (kernel uses bf16 matmul operands)
    ref = _reference(x, params)
    assert jnp.allclose(out, ref, atol=0.15), jnp.max(jnp.abs(out - ref))
    print("KERNEL_OK")
</pallas_src>

<mosaic_0001>
module attributes {stable_mosaic.version = 11 : i64} {
  func.func @dnn_kernel(%arg0: i32, %arg1: memref<8x784xf32, #tpu.memory_space<vmem>>, %arg2: memref<784x512xbf16, #tpu.memory_space<vmem>>, %arg3: memref<1x512xf32, #tpu.memory_space<vmem>>, %arg4: memref<512x128xbf16, #tpu.memory_space<vmem>>, %arg5: memref<1x128xf32, #tpu.memory_space<vmem>>, %arg6: memref<128x128xbf16, #tpu.memory_space<vmem>>, %arg7: memref<1x128xf32, #tpu.memory_space<vmem>>, %arg8: memref<8x128xf32, #tpu.memory_space<vmem>>) attributes {dimension_semantics = [#tpu.dimension_semantics<parallel>], iteration_bounds = array<i64: 1>, scalar_prefetch = 0 : i64, scratch_operands = 0 : i64, tpu.core_type = #tpu.core_type<tc>, window_params = [{transform_indices = @transform_0, window_bounds = array<i64: 8, 784>}, {pipeline_mode = #tpu.pipeline_mode<synchronous>, transform_indices = @transform_1, window_bounds = array<i64: 784, 512>}, {pipeline_mode = #tpu.pipeline_mode<synchronous>, transform_indices = @transform_2, window_bounds = array<i64: 1, 512>}, {pipeline_mode = #tpu.pipeline_mode<synchronous>, transform_indices = @transform_3, window_bounds = array<i64: 512, 128>}, {pipeline_mode = #tpu.pipeline_mode<synchronous>, transform_indices = @transform_4, window_bounds = array<i64: 1, 128>}, {pipeline_mode = #tpu.pipeline_mode<synchronous>, transform_indices = @transform_5, window_bounds = array<i64: 128, 128>}, {pipeline_mode = #tpu.pipeline_mode<synchronous>, transform_indices = @transform_6, window_bounds = array<i64: 1, 128>}, {transform_indices = @transform_7, window_bounds = array<i64: 8, 128>}]} {
    %c0 = arith.constant 0 : index
    %c0_0 = arith.constant 0 : index
    %0 = vector.load %arg1[%c0, %c0_0] : memref<8x784xf32, #tpu.memory_space<vmem>>, vector<8x784xf32>
    %1 = arith.truncf %0 : vector<8x784xf32> to vector<8x784xbf16>
    %c0_1 = arith.constant 0 : index
    %c0_2 = arith.constant 0 : index
    %2 = vector.load %arg2[%c0_1, %c0_2] : memref<784x512xbf16, #tpu.memory_space<vmem>>, vector<784x512xbf16>
    %cst = arith.constant dense<0.000000e+00> : vector<8x512xf32>
    %3 = tpu.matmul %1, %2, %cst {dimension_numbers = #tpu.dot_dimension_numbers<[1], [0], [0], [1], [0, 0, 1, 1], [], []>} : vector<8x784xbf16>, vector<784x512xbf16>, vector<8x512xf32> -> vector<8x512xf32>
    %c0_3 = arith.constant 0 : index
    %c0_4 = arith.constant 0 : index
    %4 = vector.load %arg3[%c0_3, %c0_4] : memref<1x512xf32, #tpu.memory_space<vmem>>, vector<1x512xf32>
    %5 = vector.broadcast %4 : vector<1x512xf32> to vector<8x512xf32>
    %6 = arith.addf %3, %5 : vector<8x512xf32>
    %cst_5 = arith.constant 0.000000e+00 : f32
    %7 = vector.broadcast %cst_5 : f32 to vector<8x512xf32>
    %8 = arith.maximumf %6, %7 : vector<8x512xf32>
    %9 = arith.truncf %8 : vector<8x512xf32> to vector<8x512xbf16>
    %c0_6 = arith.constant 0 : index
    %c0_7 = arith.constant 0 : index
    %10 = vector.load %arg4[%c0_6, %c0_7] : memref<512x128xbf16, #tpu.memory_space<vmem>>, vector<512x128xbf16>
    %cst_8 = arith.constant dense<0.000000e+00> : vector<8x128xf32>
    %11 = tpu.matmul %9, %10, %cst_8 {dimension_numbers = #tpu.dot_dimension_numbers<[1], [0], [0], [1], [0, 0, 1, 1], [], []>} : vector<8x512xbf16>, vector<512x128xbf16>, vector<8x128xf32> -> vector<8x128xf32>
    %c0_9 = arith.constant 0 : index
    %c0_10 = arith.constant 0 : index
    %12 = vector.load %arg5[%c0_9, %c0_10] : memref<1x128xf32, #tpu.memory_space<vmem>>, vector<1x128xf32>
    %13 = vector.broadcast %12 : vector<1x128xf32> to vector<8x128xf32>
    %14 = arith.addf %11, %13 : vector<8x128xf32>
    %cst_11 = arith.constant 0.000000e+00 : f32
    %15 = vector.broadcast %cst_11 : f32 to vector<8x128xf32>
    %16 = arith.maximumf %14, %15 : vector<8x128xf32>
    %17 = arith.truncf %16 : vector<8x128xf32> to vector<8x128xbf16>
    %c0_12 = arith.constant 0 : index
    %c0_13 = arith.constant 0 : index
    %18 = vector.load %arg6[%c0_12, %c0_13] : memref<128x128xbf16, #tpu.memory_space<vmem>>, vector<128x128xbf16>
    %cst_14 = arith.constant dense<0.000000e+00> : vector<8x128xf32>
    %19 = tpu.matmul %17, %18, %cst_14 {dimension_numbers = #tpu.dot_dimension_numbers<[1], [0], [0], [1], [0, 0, 1, 1], [], []>} : vector<8x128xbf16>, vector<128x128xbf16>, vector<8x128xf32> -> vector<8x128xf32>
    %c0_15 = arith.constant 0 : index
    %c0_16 = arith.constant 0 : index
    %20 = vector.load %arg7[%c0_15, %c0_16] : memref<1x128xf32, #tpu.memory_space<vmem>>, vector<1x128xf32>
    %21 = vector.broadcast %20 : vector<1x128xf32> to vector<8x128xf32>
    %22 = arith.addf %19, %21 : vector<8x128xf32>
    %cst_17 = arith.constant dense<0xFF800000> : vector<8xf32>
    %23 = vector.multi_reduction <maximumf>, %22, %cst_17 [1] : vector<8x128xf32> to vector<8xf32>
    %24 = vector.shape_cast %23 : vector<8xf32> to vector<8x1xf32>
    %25 = vector.broadcast %24 : vector<8x1xf32> to vector<8x128xf32>
    %26 = arith.subf %22, %25 : vector<8x128xf32>
    %27 = math.exp %26 : vector<8x128xf32>
    %cst_18 = arith.constant dense<0.000000e+00> : vector<8xf32>
    %28 = vector.multi_reduction <add>, %27, %cst_18 [1] : vector<8x128xf32> to vector<8xf32>
    %29 = vector.shape_cast %28 : vector<8xf32> to vector<8x1xf32>
    %30 = math.log %29 : vector<8x1xf32>
    %31 = vector.broadcast %30 : vector<8x1xf32> to vector<8x128xf32>
    %32 = arith.subf %26, %31 : vector<8x128xf32>
    %c0_19 = arith.constant 0 : index
    %c0_20 = arith.constant 0 : index
    %33 = vector.load %arg8[%c0_19, %c0_20] : memref<8x128xf32, #tpu.memory_space<vmem>>, vector<8x128xf32>
    tpu.vector_store %arg8[%c0_19, %c0_20], %32 {strides = array<i32>} : memref<8x128xf32, #tpu.memory_space<vmem>>, vector<8x128xf32>,
    return
  }
  func.func @transform_0(%arg0: i32) -> (i32, i32) {
    %c0_i32 = arith.constant 0 : i32
    %c0_i32_0 = arith.constant 0 : i32
    return %arg0, %c0_i32 : i32, i32
  }
  func.func @transform_1(%arg0: i32) -> (i32, i32) {
    %c0_i32 = arith.constant 0 : i32
    %c0_i32_0 = arith.constant 0 : i32
    %c0_i32_1 = arith.constant 0 : i32
    return %c0_i32, %c0_i32_0 : i32, i32
  }
  func.func @transform_2(%arg0: i32) -> (i32, i32) {
    %c0_i32 = arith.constant 0 : i32
    %c0_i32_0 = arith.constant 0 : i32
    %c0_i32_1 = arith.constant 0 : i32
    return %c0_i32, %c0_i32_0 : i32, i32
  }
  func.func @transform_3(%arg0: i32) -> (i32, i32) {
    %c0_i32 = arith.constant 0 : i32
    %c0_i32_0 = arith.constant 0 : i32
    %c0_i32_1 = arith.constant 0 : i32
    return %c0_i32, %c0_i32_0 : i32, i32
  }
  func.func @transform_4(%arg0: i32) -> (i32, i32) {
    %c0_i32 = arith.constant 0 : i32
    %c0_i32_0 = arith.constant 0 : i32
    %c0_i32_1 = arith.constant 0 : i32
    return %c0_i32, %c0_i32_0 : i32, i32
  }
  func.func @transform_5(%arg0: i32) -> (i32, i32) {
    %c0_i32 = arith.constant 0 : i32
    %c0_i32_0 = arith.constant 0 : i32
    %c0_i32_1 = arith.constant 0 : i32
    return %c0_i32, %c0_i32_0 : i32, i32
  }
  func.func @transform_6(%arg0: i32) -> (i32, i32) {
    %c0_i32 = arith.constant 0 : i32
    %c0_i32_0 = arith.constant 0 : i32
    %c0_i32_1 = arith.constant 0 : i32
    return %c0_i32, %c0_i32_0 : i32, i32
  }
  func.func @transform_7(%arg0: i32) -> (i32, i32) {
    %c0_i32 = arith.constant 0 : i32
    %c0_i32_0 = arith.constant 0 : i32
    return %arg0, %c0_i32 : i32, i32
  }
}

</mosaic_0001>

<bundles_post_ra>
// kernel: tpu_custom_call.1
= control target key start
LH: loop header
LB: loop body
LE: loop exit
PB: predicated region body
PF: predicated region fallthrough
CT: control target
= control target key end

     0   :  { %12 = vsyncpa [#allocation3], 0  ;;  %s3062_s0 = inlined_call_operand.hbm [shape: f32[8,784], index: 0, kind: input, shape index: {}]   ;;  %s3063_s1 = inlined_call_operand.hbm [shape: bf16[784,512], index: 1, kind: input, shape index: {}]   ;;  %s3064_s2 = inlined_call_operand.vmem [shape: f32[1,512], index: 2, kind: input, shape index: {}]   ;;  %s3065_s3 = inlined_call_operand.hbm [shape: bf16[512,128], index: 3, kind: input, shape index: {}]   ;;  %s3066_s4 = inlined_call_operand.vmem [shape: f32[1,128], index: 4, kind: input, shape index: {}]   ;;  %s3067_s5 = inlined_call_operand.hbm [shape: bf16[128,128], index: 5, kind: input, shape index: {}]   ;;  %s3068_s6 = inlined_call_operand.vmem [shape: f32[1,128], index: 6, kind: input, shape index: {}]   ;;  %s3069_s7 = inlined_call_operand.hbm [shape: f32[8,128], index: 7, kind: output, shape index: {}]  }
   0x1   :  { %13 = vsyncpa [#allocation6], 0 }
   0x2   :  { %14 = vsyncpa [#allocation9], 0 }
   0x3   :  { %15 = vsyncpa [#allocation4], 0  ;;  %s2924_s24 = smov [#allocation5]   ;;  %s2806_s28 = scalar_lea.hbm %s3063_s1, 25088 }
   0x4   :  { %s31_s25 = sshll.u32 %s2924_s24, 4  ;;  %p2807_p0 = scmp.ne.s32.totalorder %s3063_s1, %s2806_s28  ;;  %s32_s25 = int_to_ptr.vmem [resolvable:$true] %s31_s25 }
   0x5   :  { %p2810_p1 = scmp.lt.u32.totalorder %s2806_s28, %s3063_s1 }
   0x7   :  { %p2812_p2 = pnand %p2810_p1, %p2807_p0 }
   0x9   :  { %2815 = shalt.err (!%p2812_p2)
}
   0xa   :  { %s2816_s10 = scalar_lea.vmem %s32_s25, 25088  ;;  %p2821_p4 = scmp.lt.s32.totalorder %s32_s25, %s32_s25 }
   0xb   :  { %p2817_p3 = scmp.ne.s32.totalorder %s32_s25, %s2816_s10  ;;  %p2822_p5 = scmp.lt.s32.totalorder %s2816_s10, %s2816_s10 }
   0xd   :  { %p2823_p6 = por %p2822_p5, %p2821_p4 }
   0xf   :  { %p2824_p7 = pnand %p2823_p6, %p2817_p3 }
  0x11   :  { %2827 = shalt.err (!%p2824_p7)
}
  0x12   :  { %s2925_s11 = smov 256   ;;  %s2926_s12 = smov 16  }
  0x13   :  { %37 = dma.hbm_to_vmem [thread:$0]  %s3063_s1, 25088, %s32_s25, [#allocation6], %s2925_s11, %s2925_s11, %s2926_s12  }
  0x14   :  { %s2927_s15 = smov [#allocation2]   ;;  %s2928_s17 = smov [#allocation7]  }
  0x15   :  { %s22_s16 = sshll.u32 %s2927_s15, 4  ;;  %s45_s18 = sshll.u32 %s2928_s17, 4  ;;  %s23_s16 = int_to_ptr.vmem [resolvable:$true] %s22_s16  ;;  %s46_s18 = int_to_ptr.vmem [resolvable:$true] %s45_s18 }
  0x16   :  { %s2828_s21 = scalar_lea.hbm %s3062_s0, 896 }
  0x17   :  { %p2829_p8 = scmp.ne.s32.totalorder %s3062_s0, %s2828_s21  ;;  %p2832_p9 = scmp.lt.u32.totalorder %s2828_s21, %s3062_s0 }
  0x19   :  { %p2834_p10 = pnand %p2832_p9, %p2829_p8 }
  0x1b   :  { %2837 = shalt.err (!%p2834_p10)
}
  0x1c   :  { %s2838_s1 = scalar_lea.vmem %s23_s16, 896  ;;  %p2843_p12 = scmp.lt.s32.totalorder %s23_s16, %s23_s16 }
  0x1d   :  { %p2839_p11 = scmp.ne.s32.totalorder %s23_s16, %s2838_s1  ;;  %p2844_p13 = scmp.lt.s32.totalorder %s2838_s1, %s2838_s1 }
  0x1f   :  { %p2845_p0 = por %p2844_p13, %p2843_p12 }
  0x21   :  { %p2846_p1 = pnand %p2845_p0, %p2839_p11 }
  0x23   :  { %2849 = shalt.err (!%p2846_p1)
}
  0x24   :  { %25 = dma.hbm_to_vmem [thread:$0]  %s3062_s0, 896, %s23_s16, [#allocation3]  }
  0x25   :  { %s2850_s30 = scalar_lea.hbm %s3065_s3, 4096 }
  0x26   :  { %p2851_p2 = scmp.ne.s32.totalorder %s3065_s3, %s2850_s30  ;;  %p2854_p3 = scmp.lt.u32.totalorder %s2850_s30, %s3065_s3 }
  0x28   :  { %p2856_p4 = pnand %p2854_p3, %p2851_p2 }
  0x2a   :  { %2859 = shalt.err (!%p2856_p4)
}
  0x2b   :  { %s2860_s12 = scalar_lea.vmem %s46_s18, 4096  ;;  %p2865_p6 = scmp.lt.s32.totalorder %s46_s18, %s46_s18 }
  0x2c   :  { %p2861_p5 = scmp.ne.s32.totalorder %s46_s18, %s2860_s12  ;;  %p2866_p7 = scmp.lt.s32.totalorder %s2860_s12, %s2860_s12 }
  0x2e   :  { %p2867_p8 = por %p2866_p7, %p2865_p6 }
  0x30   :  { %p2868_p9 = pnand %p2867_p8, %p2861_p5 }
  0x32   :  { %2871 = shalt.err (!%p2868_p9)
}
  0x33   :  { %s2929_s0 = smov 64   ;;  %s2930_s13 = smov 4  }
  0x34   :  { %51 = dma.hbm_to_vmem [thread:$0]  %s3065_s3, 4096, %s46_s18, [#allocation6], %s2929_s0, %s2929_s0, %s2930_s13  }
  0x35   :  { %s2931_s16 = smov [#allocation8]   ;;  %s2872_s21 = scalar_lea.hbm %s3067_s5, 1024 }
  0x36   :  { %s59_s17 = sshll.u32 %s2931_s16, 4  ;;  %p2873_p10 = scmp.ne.s32.totalorder %s3067_s5, %s2872_s21  ;;  %s60_s17 = int_to_ptr.vmem [resolvable:$true] %s59_s17 }
  0x37   :  { %p2876_p11 = scmp.lt.u32.totalorder %s2872_s21, %s3067_s5 }
  0x39   :  { %p2878_p12 = pnand %p2876_p11, %p2873_p10 }
  0x3b   :  { %2881 = shalt.err (!%p2878_p12)
}
  0x3c   :  { %s2882_s1 = scalar_lea.vmem %s60_s17, 1024  ;;  %p2887_p0 = scmp.lt.s32.totalorder %s60_s17, %s60_s17 }
  0x3d   :  { %p2883_p13 = scmp.ne.s32.totalorder %s60_s17, %s2882_s1  ;;  %p2888_p1 = scmp.lt.s32.totalorder %s2882_s1, %s2882_s1 }
  0x3f   :  { %p2889_p2 = por %p2888_p1, %p2887_p0 }
  0x41   :  { %p2890_p3 = pnand %p2889_p2, %p2883_p13 }
  0x43   :  { %2893 = shalt.err (!%p2890_p3)
}
  0x44   :  { %65 = dma.hbm_to_vmem [thread:$0]  %s3067_s5, 1024, %s60_s17, [#allocation9], %s2929_s0, %s2929_s0, %s2930_s13  }
  0x45   :  { %2916 = dma.done.wait [#allocation3], 896  }
  0x46   :  { %2917 = vsyncadd [#allocation3], 4294966400 }
  0x47   :  { %2918 = dma.done.wait [#allocation6], 29184  }
  0x48   :  { %2919 = vsyncadd [#allocation6], 4294938112 }
  0x49   :  { %2920 = dma.done.wait [#allocation9], 1024  }
  0x4a   :  { %2921 = vsyncadd [#allocation9], 4294966272  ;;  %v2932_v0 = vmov 0   ;;  %v2468_v1 = vld [vmem:[#allocation5 + $0x4] ss:$16 sps:$4 sm:$0xff]   ;;  %v87_v6 = vld [vmem:[#allocation2 + $0x30] sm:$0xff] }
  0x4b   :  { %1452 = vmatprep.mubr.bf16.mxu1 %v2932_v0  ;;  %v2470_v2 = vld [vmem:[#allocation5 + $0x604] ss:$16 sps:$4 sm:$0xff]   ;;  %1297 = vmatprep.subr.bf16.mxu0 %v2468_v1  ;;  %v2472_v3 = vld [vmem:[#allocation5] ss:$16 sps:$4 sm:$0xff]   ;;  %v3025_v7 = vpack.c.bf16 %v87_v6, %v87_v6  ;;  %vm1293_vm0 = vcmask 130048   ;;  %vm2934_vm1 = vmmov 0  }
  0x4c   :  { %v2473_v4 = vld [vmem:[#allocation5 + $0x600] ss:$16 sps:$4 sm:$0xff]   ;;  %1420 = vmatprep.subr.bf16.mxu1 %v2470_v2  ;;  %v2474_v5 = vld [vmem:[#allocation5 + $0x24] ss:$16 sps:$4 sm:$0xff]   ;;  %1298 = vmatpush1.bf16.msra.mxu0 %v2472_v3  ;;  %v2476_v8 = vld [vmem:[#allocation5 + $0x8] ss:$16 sps:$4 sm:$0xff]  }
  0x4d   :  { %1421 = vmatpush1.bf16.msra.mxu1 %v2473_v4  ;;  %1299 = vmatprep.subr.bf16.mxu0 %v2474_v5  ;;  %v2478_v9 = vld [vmem:[#allocation5 + $0xc] ss:$16 sps:$4 sm:$0xff]   ;;  %v2479_v10 = vld [vmem:[#allocation5 + $0x20] ss:$16 sps:$4 sm:$0xff]   ;;  %v2480_v11 = vld [vmem:[#allocation5 + $0x44] ss:$16 sps:$4 sm:$0xff]  }
  0x4e   :  { %1461 = vmatprep.subr.bf16.mxu1 %v2478_v9  ;;  %v2482_v12 = vld [vmem:[#allocation5 + $0x28] ss:$16 sps:$4 sm:$0xff]   ;;  %v2484_v13 = vld [vmem:[#allocation5 + $0x2c] ss:$16 sps:$4 sm:$0xff]   ;;  %v2485_v14 = vld [vmem:[#allocation5 + $0x40] ss:$16 sps:$4 sm:$0xff]  }
  0x4f   :  { %v2486_v15 = vld [vmem:[#allocation5 + $0x64] ss:$16 sps:$4 sm:$0xff]   ;;  %v2490_v16 = vld [vmem:[#allocation5 + $0x4c] ss:$16 sps:$4 sm:$0xff]   ;;  %v2488_v17 = vld [vmem:[#allocation5 + $0x48] ss:$16 sps:$4 sm:$0xff]  }
  0x50   :  { %2313 = vmatmul.mubr.msk.bf16.vlgmr.msra.gmra.mrb[0].mxu1 %vm1293_vm0, %v3025_v7  ;;  %1300 = vmatpush1.bf16.msra.mxu0 %v2479_v10  ;;  %v2491_v18 = vld [vmem:[#allocation5 + $0x60] ss:$16 sps:$4 sm:$0xff]   ;;  %v2492_v19 = vld [vmem:[#allocation5 + $0x84] ss:$16 sps:$4 sm:$0xff]   ;;  %v2496_v20 = vld [vmem:[#allocation5 + $0x6c] ss:$16 sps:$4 sm:$0xff]  }
  0x51   :  { %1462 = vmatpush1.bf16.msra.mxu1 %v2476_v8  ;;  %1301 = vmatprep.subr.bf16.mxu0 %v2480_v11  ;;  %v2494_v21 = vld [vmem:[#allocation5 + $0x68] ss:$16 sps:$4 sm:$0xff]   ;;  %v2497_v22 = vld [vmem:[#allocation5 + $0x80] ss:$16 sps:$4 sm:$0xff]   ;;  %v2498_v23 = vld [vmem:[#allocation5 + $0xa4] ss:$16 sps:$4 sm:$0xff]  }
  0x52   :  { %1463 = vmatprep.subr.bf16.mxu1 %v2484_v13  ;;  %v2502_v24 = vld [vmem:[#allocation5 + $0x8c] ss:$16 sps:$4 sm:$0xff]   ;;  %v2500_v25 = vld [vmem:[#allocation5 + $0x88] ss:$16 sps:$4 sm:$0xff]   ;;  %v2503_v26 = vld [vmem:[#allocation5 + $0xa0] ss:$16 sps:$4 sm:$0xff]  }
  0x53   :  { %v2504_v27 = vld [vmem:[#allocation5 + $0xc4] ss:$16 sps:$4 sm:$0xff]   ;;  %v2508_v28 = vld [vmem:[#allocation5 + $0xac] ss:$16 sps:$4 sm:$0xff]   ;;  %v2506_v29 = vld [vmem:[#allocation5 + $0xa8] ss:$16 sps:$4 sm:$0xff]  }
  0x54   :  { %1302 = vmatpush1.bf16.msra.mxu0 %v2485_v14  ;;  %v2509_v30 = vld [vmem:[#allocation5 + $0xc0] ss:$16 sps:$4 sm:$0xff]   ;;  %v2510_v31 = vld [vmem:[#allocation5 + $0xe4] ss:$16 sps:$4 sm:$0xff]   ;;  %v2514_v32 = vld [vmem:[#allocation5 + $0xcc] ss:$16 sps:$4 sm:$0xff]  }
  0x55   :  { %1464 = vmatpush1.bf16.msra.mxu1 %v2482_v12  ;;  %1303 = vmatprep.subr.bf16.mxu0 %v2486_v15  ;;  %v2512_v33 = vld [vmem:[#allocation5 + $0xc8] ss:$16 sps:$4 sm:$0xff]   ;;  %v2515_v34 = vld [vmem:[#allocation5 + $0xe0] ss:$16 sps:$4 sm:$0xff]   ;;  %v2516_v35 = vld [vmem:[#allocation5 + $0x104] ss:$16 sps:$4 sm:$0xff]  }
  0x56   :  { %1465 = vmatprep.subr.bf16.mxu1 %v2490_v16  ;;  %v2520_v36 = vld [vmem:[#allocation5 + $0xec] ss:$16 sps:$4 sm:$0xff]   ;;  %v2518_v37 = vld [vmem:[#allocation5 + $0xe8] ss:$16 sps:$4 sm:$0xff]   ;;  %v2521_v38 = vld [vmem:[#allocation5 + $0x100] ss:$16 sps:$4 sm:$0xff]  }
  0x57   :  { %v2522_v39 = vld [vmem:[#allocation5 + $0x124] ss:$16 sps:$4 sm:$0xff]   ;;  %v2526_v40 = vld [vmem:[#allocation5 + $0x10c] ss:$16 sps:$4 sm:$0xff]   ;;  %v2524_v41 = vld [vmem:[#allocation5 + $0x108] ss:$16 sps:$4 sm:$0xff]  }
  0x58   :  { %1304 = vmatpush1.bf16.msra.mxu0 %v2491_v18  ;;  %v2527_v42 = vld [vmem:[#allocation5 + $0x120] ss:$16 sps:$4 sm:$0xff]   ;;  %v2528_v43 = vld [vmem:[#allocation5 + $0x144] ss:$16 sps:$4 sm:$0xff]   ;;  %v2532_v44 = vld [vmem:[#allocation5 + $0x12c] ss:$16 sps:$4 sm:$0xff]  }
  0x59   :  { %1466 = vmatpush1.bf16.msra.mxu1 %v2488_v17  ;;  %1305 = vmatprep.subr.bf16.mxu0 %v2492_v19  ;;  %v2530_v45 = vld [vmem:[#allocation5 + $0x128] ss:$16 sps:$4 sm:$0xff]   ;;  %v2533_v46 = vld [vmem:[#allocation5 + $0x140] ss:$16 sps:$4 sm:$0xff]   ;;  %v2534_v47 = vld [vmem:[#allocation5 + $0x164] ss:$16 sps:$4 sm:$0xff]  }
  0x5a   :  { %1467 = vmatprep.subr.bf16.mxu1 %v2496_v20  ;;  %v2538_v48 = vld [vmem:[#allocation5 + $0x14c] ss:$16 sps:$4 sm:$0xff]   ;;  %v82_v49 = vld [vmem:[#allocation2 + $0x8] sm:$0xff]  ;;  %v2536_v50 = vld [vmem:[#allocation5 + $0x148] ss:$16 sps:$4 sm:$0xff]  }
  0x5b   :  { %v2539_v51 = vld [vmem:[#allocation5 + $0x160] ss:$16 sps:$4 sm:$0xff]   ;;  %v89_v52 = vpack.c.bf16 %v82_v49, %v82_v49  ;;  %v2540_v53 = vld [vmem:[#allocation5 + $0x184] ss:$16 sps:$4 sm:$0xff]   ;;  %v2544_v54 = vld [vmem:[#allocation5 + $0x16c] ss:$16 sps:$4 sm:$0xff]  }
  0x5c   :  { %1306 = vmatpush1.bf16.msra.mxu0 %v2497_v22  ;;  %v2542_v55 = vld [vmem:[#allocation5 + $0x168] ss:$16 sps:$4 sm:$0xff]   ;;  %v2545_v56 = vld [vmem:[#allocation5 + $0x180] ss:$16 sps:$4 sm:$0xff]   ;;  %v2546_v57 = vld [vmem:[#allocation5 + $0x1a4] ss:$16 sps:$4 sm:$0xff]  }
  0x5d   :  { %1468 = vmatpush1.bf16.msra.mxu1 %v2494_v21  ;;  %1307 = vmatprep.subr.bf16.mxu0 %v2498_v23  ;;  %v2550_v58 = vld [vmem:[#allocation5 + $0x18c] ss:$16 sps:$4 sm:$0xff]   ;;  %v2548_v59 = vld [vmem:[#allocation5 + $0x188] ss:$16 sps:$4 sm:$0xff]   ;;  %v2551_v60 = vld [vmem:[#allocation5 + $0x1a0] ss:$16 sps:$4 sm:$0xff]  }
  0x5e   :  { %1469 = vmatprep.subr.bf16.mxu1 %v2502_v24  ;;  %1329 = vmatprep.mubr.bf16.mxu0 %v89_v52  ;;  %v2552_v61 = vld [vmem:[#allocation5 + $0x1c4] ss:$16 sps:$4 sm:$0xff]   ;;  %v2556_v62 = vld [vmem:[#allocation5 + $0x1ac] ss:$16 sps:$4 sm:$0xff]   ;;  %v2554_v63 = vld [vmem:[#allocation5 + $0x1a8] ss:$16 sps:$4 sm:$0xff]  }
  0x5f   :  { %1493 = vmatprep.mubr.bf16.mxu1 %v89_v52  ;;  %v2557_v1 = vld [vmem:[#allocation5 + $0x1c0] ss:$16 sps:$4 sm:$0xff]   ;;  %v2558_v2 = vld [vmem:[#allocation5 + $0x1e4] ss:$16 sps:$4 sm:$0xff]   ;;  %v2562_v3 = vld [vmem:[#allocation5 + $0x1cc] ss:$16 sps:$4 sm:$0xff]  }
  0x60   :  { %1308 = vmatpush1.bf16.msra.mxu0 %v2503_v26  ;;  %v2560_v4 = vld [vmem:[#allocation5 + $0x1c8] ss:$16 sps:$4 sm:$0xff]   ;;  %v2563_v5 = vld [vmem:[#allocation5 + $0x1e0] ss:$16 sps:$4 sm:$0xff]   ;;  %v2566_v6 = vld [vmem:[#allocation5 + $0x204] ss:$16 sps:$4 sm:$0xff]  }
  0x61   :  { %1470 = vmatpush1.bf16.msra.mxu1 %v2500_v25  ;;  %1309 = vmatprep.subr.bf16.mxu0 %v2504_v27  ;;  %v81_v8 = vld [vmem:[#allocation2] sm:$0xff]  ;;  %v2564_v10 = vld [vmem:[#allocation5 + $0x200] ss:$16 sps:$4 sm:$0xff]   ;;  %v2572_v13 = vld [vmem:[#allocation5 + $0x224] ss:$16 sps:$4 sm:$0xff]  }
  0x62   :  { %1471 = vmatprep.subr.bf16.mxu1 %v2508_v28  ;;  %v2569_v9 = vld [vmem:[#allocation5 + $0x1ec] ss:$16 sps:$4 sm:$0xff]   ;;  %v88_v11 = vpack.c.bf16 %v81_v8, %v81_v8  ;;  %v2567_v12 = vld [vmem:[#allocation5 + $0x1e8] ss:$16 sps:$4 sm:$0xff]   ;;  %v2570_v15 = vld [vmem:[#allocation5 + $0x220] ss:$16 sps:$4 sm:$0xff]  }
  0x63   :  { %v2575_v14 = vld [vmem:[#allocation5 + $0x20c] ss:$16 sps:$4 sm:$0xff]   ;;  %v2573_v16 = vld [vmem:[#allocation5 + $0x208] ss:$16 sps:$4 sm:$0xff]   ;;  %v2578_v17 = vld [vmem:[#allocation5 + $0x244] ss:$16 sps:$4 sm:$0xff]  }
  0x64   :  { %1310 = vmatpush1.bf16.msra.mxu0 %v2509_v30  ;;  %v2581_v18 = vld [vmem:[#allocation5 + $0x22c] ss:$16 sps:$4 sm:$0xff]   ;;  %v2576_v19 = vld [vmem:[#allocation5 + $0x240] ss:$16 sps:$4 sm:$0xff]   ;;  %v2579_v20 = vld [vmem:[#allocation5 + $0x228] ss:$16 sps:$4 sm:$0xff]  }
  0x65   :  { %1472 = vmatpush1.bf16.msra.mxu1 %v2506_v29  ;;  %1311 = vmatprep.subr.bf16.mxu0 %v2510_v31  ;;  %v2584_v21 = vld [vmem:[#allocation5 + $0x264] ss:$16 sps:$4 sm:$0xff]   ;;  %v2587_v22 = vld [vmem:[#allocation5 + $0x24c] ss:$16 sps:$4 sm:$0xff]   ;;  %v2582_v23 = vld [vmem:[#allocation5 + $0x260] ss:$16 sps:$4 sm:$0xff]  }
  0x66   :  { %1473 = vmatprep.subr.bf16.mxu1 %v2514_v32  ;;  %v2585_v24 = vld [vmem:[#allocation5 + $0x248] ss:$16 sps:$4 sm:$0xff]   ;;  %v2590_v25 = vld [vmem:[#allocation5 + $0x284] ss:$16 sps:$4 sm:$0xff]   ;;  %v2593_v26 = vld [vmem:[#allocation5 + $0x26c] ss:$16 sps:$4 sm:$0xff]  }
  0x67   :  { %v2588_v27 = vld [vmem:[#allocation5 + $0x280] ss:$16 sps:$4 sm:$0xff]   ;;  %v2591_v28 = vld [vmem:[#allocation5 + $0x268] ss:$16 sps:$4 sm:$0xff]   ;;  %v2596_v29 = vld [vmem:[#allocation5 + $0x2a4] ss:$16 sps:$4 sm:$0xff]  }
  0x68   :  { %1312 = vmatpush1.bf16.msra.mxu0 %v2515_v34  ;;  %v2599_v30 = vld [vmem:[#allocation5 + $0x28c] ss:$16 sps:$4 sm:$0xff]   ;;  %v2594_v31 = vld [vmem:[#allocation5 + $0x2a0] ss:$16 sps:$4 sm:$0xff]   ;;  %v2597_v32 = vld [vmem:[#allocation5 + $0x288] ss:$16 sps:$4 sm:$0xff]  }
  0x69   :  { %1474 = vmatpush1.bf16.msra.mxu1 %v2512_v33  ;;  %1313 = vmatprep.subr.bf16.mxu0 %v2516_v35  ;;  %v2602_v33 = vld [vmem:[#allocation5 + $0x2c4] ss:$16 sps:$4 sm:$0xff]   ;;  %v2605_v34 = vld [vmem:[#allocation5 + $0x2ac] ss:$16 sps:$4 sm:$0xff]   ;;  %v2618_v49 = vld [vmem:[#allocation5 + $0x320] ss:$16 sps:$4 sm:$0xff]  }
  0x6a   :  { %1475 = vmatprep.subr.bf16.mxu1 %v2520_v36  ;;  %v84_v35 = vld [vmem:[#allocation2 + $0x18] sm:$0xff]  ;;  %v2629_v52 = vld [vmem:[#allocation5 + $0x32c] ss:$16 sps:$4 sm:$0xff]   ;;  %v2651_v8 = vld [vmem:[#allocation5 + $0x3a8] ss:$16 sps:$4 sm:$0xff]  }
  0x6b   :  { %v2600_v36 = vld [vmem:[#allocation5 + $0x2c0] ss:$16 sps:$4 sm:$0xff]  }
  0x6c   :  { %1314 = vmatpush1.bf16.msra.mxu0 %v2521_v38  ;;  %v2603_v38 = vld [vmem:[#allocation5 + $0x2a8] ss:$16 sps:$4 sm:$0xff]  }
  0x6d   :  { %1476 = vmatpush1.bf16.msra.mxu1 %v2518_v37  ;;  %1315 = vmatprep.subr.bf16.mxu0 %v2522_v39  ;;  %v91_v37 = vpack.c.bf16 %v84_v35, %v84_v35  ;;  %v2608_v39 = vld [vmem:[#allocation5 + $0x2e4] ss:$16 sps:$4 sm:$0xff]   ;;  %v2684_v35 = vld [vmem:[#allocation5 + $0x480] ss:$16 sps:$4 sm:$0xff]  }
  0x6e   :  { %1477 = vmatprep.subr.bf16.mxu1 %v2526_v40  ;;  %v2611_v40 = vld [vmem:[#allocation5 + $0x2cc] ss:$16 sps:$4 sm:$0xff]  }
  0x70   :  { %1316 = vmatpush1.bf16.msra.mxu0 %v2527_v42  ;;  %v2609_v42 = vld [vmem:[#allocation5 + $0x2c8] ss:$16 sps:$4 sm:$0xff]  }
  0x71   :  { %1478 = vmatpush1.bf16.msra.mxu1 %v2524_v41  ;;  %1317 = vmatprep.subr.bf16.mxu0 %v2528_v43  ;;  %v2606_v41 = vld [vmem:[#allocation5 + $0x2e0] ss:$16 sps:$4 sm:$0xff]   ;;  %v2614_v43 = vld [vmem:[#allocation5 + $0x304] ss:$16 sps:$4 sm:$0xff]  }
  0x72   :  { %1479 = vmatprep.subr.bf16.mxu1 %v2532_v44  ;;  %v2617_v44 = vld [vmem:[#allocation5 + $0x2ec] ss:$16 sps:$4 sm:$0xff]  }
  0x74   :  { %1318 = vmatpush1.bf16.msra.mxu0 %v2533_v46  ;;  %v2615_v46 = vld [vmem:[#allocation5 + $0x2e8] ss:$16 sps:$4 sm:$0xff]  }
  0x75   :  { %1480 = vmatpush1.bf16.msra.mxu1 %v2530_v45  ;;  %1319 = vmatprep.subr.bf16.mxu0 %v2534_v47  ;;  %v2612_v45 = vld [vmem:[#allocation5 + $0x300] ss:$16 sps:$4 sm:$0xff]   ;;  %v2620_v47 = vld [vmem:[#allocation5 + $0x324] ss:$16 sps:$4 sm:$0xff]  }
  0x76   :  { %1481 = vmatprep.subr.bf16.mxu1 %v2538_v48  ;;  %v2623_v48 = vld [vmem:[#allocation5 + $0x30c] ss:$16 sps:$4 sm:$0xff]  }
  0x78   :  { %1320 = vmatpush1.bf16.msra.mxu0 %v2539_v51  ;;  %v2626_v51 = vld [vmem:[#allocation5 + $0x344] ss:$16 sps:$4 sm:$0xff]  }
  0x79   :  { %1482 = vmatpush1.bf16.msra.mxu1 %v2536_v50  ;;  %1321 = vmatprep.subr.bf16.mxu0 %v2540_v53  ;;  %v2621_v50 = vld [vmem:[#allocation5 + $0x308] ss:$16 sps:$4 sm:$0xff]   ;;  %v2624_v53 = vld [vmem:[#allocation5 + $0x340] ss:$16 sps:$4 sm:$0xff]  }
  0x7a   :  { %1483 = vmatprep.subr.bf16.mxu1 %v2544_v54  ;;  %v2627_v54 = vld [vmem:[#allocation5 + $0x328] ss:$16 sps:$4 sm:$0xff]  }
  0x7c   :  { %1322 = vmatpush1.bf16.msra.mxu0 %v2545_v56  ;;  %v2635_v56 = vld [vmem:[#allocation5 + $0x34c] ss:$16 sps:$4 sm:$0xff]  }
  0x7d   :  { %1484 = vmatpush1.bf16.msra.mxu1 %v2542_v55  ;;  %1323 = vmatprep.subr.bf16.mxu0 %v2546_v57  ;;  %v2632_v55 = vld [vmem:[#allocation5 + $0x364] ss:$16 sps:$4 sm:$0xff]   ;;  %v2630_v57 = vld [vmem:[#allocation5 + $0x360] ss:$16 sps:$4 sm:$0xff]  }
  0x7e   :  { %1485 = vmatprep.subr.bf16.mxu1 %v2550_v58  ;;  %v2633_v58 = vld [vmem:[#allocation5 + $0x348] ss:$16 sps:$4 sm:$0xff]  }
  0x80   :  { %1324 = vmatpush1.bf16.msra.mxu0 %v2551_v60  ;;  %v2641_v60 = vld [vmem:[#allocation5 + $0x36c] ss:$16 sps:$4 sm:$0xff]  }
  0x81   :  { %1486 = vmatpush1.bf16.msra.mxu1 %v2548_v59  ;;  %1325 = vmatprep.subr.bf16.mxu0 %v2552_v61  ;;  %v2638_v59 = vld [vmem:[#allocation5 + $0x384] ss:$16 sps:$4 sm:$0xff]   ;;  %v2636_v61 = vld [vmem:[#allocation5 + $0x380] ss:$16 sps:$4 sm:$0xff]  }
  0x82   :  { %1487 = vmatprep.subr.bf16.mxu1 %v2556_v62  ;;  %v2639_v62 = vld [vmem:[#allocation5 + $0x368] ss:$16 sps:$4 sm:$0xff]  }
  0x84   :  { %1326 = vmatpush1.bf16.msra.mxu0 %v2557_v1  ;;  %v2647_v1 = vld [vmem:[#allocation5 + $0x38c] ss:$16 sps:$4 sm:$0xff]  }
  0x85   :  { %1488 = vmatpush1.bf16.msra.mxu1 %v2554_v63  ;;  %1327 = vmatprep.subr.bf16.mxu0 %v2558_v2  ;;  %v2644_v63 = vld [vmem:[#allocation5 + $0x3a4] ss:$16 sps:$4 sm:$0xff]   ;;  %v2642_v2 = vld [vmem:[#allocation5 + $0x3a0] ss:$16 sps:$4 sm:$0xff]  }
  0x86   :  { %1489 = vmatprep.subr.bf16.mxu1 %v2562_v3  ;;  %v2645_v3 = vld [vmem:[#allocation5 + $0x388] ss:$16 sps:$4 sm:$0xff]  }
  0x88   :  { %1328 = vmatpush1.bf16.msra.mxu0 %v2563_v5  ;;  %v2653_v5 = vld [vmem:[#allocation5 + $0x3ac] ss:$16 sps:$4 sm:$0xff]  }
  0x89   :  { %1490 = vmatpush1.bf16.msra.mxu1 %v2560_v4  ;;  %1338 = vmatprep.subr.bf16.mxu0 %v2566_v6  ;;  %v2650_v4 = vld [vmem:[#allocation5 + $0x3c4] ss:$16 sps:$4 sm:$0xff]   ;;  %v2648_v6 = vld [vmem:[#allocation5 + $0x3c0] ss:$16 sps:$4 sm:$0xff]  }
  0x8a   :  { %1491 = vmatprep.subr.bf16.mxu1 %v2569_v9  ;;  %v2656_v9 = vld [vmem:[#allocation5 + $0x3e4] ss:$16 sps:$4 sm:$0xff]  }
  0x8b   :  { %1330 = vmatmul.mubr.bf16.vlgmr.msra.gmra.mrb[0].mxu0 %v88_v11 }
  0x8c   :  { %1339 = vmatpush1.bf16.msra.mxu0 %v2564_v10  ;;  %1370 = vmatprep.mubr.bf16.mxu0 %v91_v37  ;;  %v2659_v10 = vld [vmem:[#allocation5 + $0x3cc] ss:$16 sps:$4 sm:$0xff]  }
  0x8d   :  { %1492 = vmatpush1.bf16.msra.mxu1 %v2567_v12  ;;  %1340 = vmatprep.subr.bf16.mxu0 %v2572_v13  ;;  %v2657_v12 = vld [vmem:[#allocation5 + $0x3c8] ss:$16 sps:$4 sm:$0xff]  }
  0x8e   :  { %1502 = vmatprep.subr.bf16.mxu1 %v2575_v14  ;;  %v83_v13 = vld [vmem:[#allocation2 + $0x10] sm:$0xff]  ;;  %v2662_v14 = vld [vmem:[#allocation5 + $0x404] ss:$16 sps:$4 sm:$0xff]  }
  0x90   :  { %1494 = vmatmul.mubr.bf16.vlgmr.msra.gmra.mrb[4].mxu1 %v88_v11  ;;  %1341 = vmatpush1.bf16.msra.mxu0 %v2570_v15  ;;  %v2654_v11 = vld [vmem:[#allocation5 + $0x3e0] ss:$16 sps:$4 sm:$0xff]   ;;  %v2665_v15 = vld [vmem:[#allocation5 + $0x3ec] ss:$16 sps:$4 sm:$0xff]  }
  0x91   :  { %1503 = vmatpush1.bf16.msra.mxu1 %v2573_v16  ;;  %1342 = vmatprep.subr.bf16.mxu0 %v2578_v17  ;;  %v2660_v16 = vld [vmem:[#allocation5 + $0x400] ss:$16 sps:$4 sm:$0xff]   ;;  %v90_v17 = vpack.c.bf16 %v83_v13, %v83_v13 }
  0x92   :  { %1504 = vmatprep.subr.bf16.mxu1 %v2581_v18  ;;  %1534 = vmatprep.mubr.bf16.mxu1 %v91_v37  ;;  %v2663_v18 = vld [vmem:[#allocation5 + $0x3e8] ss:$16 sps:$4 sm:$0xff]   ;;  %v2692_v37 = vld [vmem:[#allocation5 + $0x4a4] ss:$16 sps:$4 sm:$0xff]   ;;  %v2744_v13 = vld [vmem:[#allocation5 + $0x5c0] ss:$16 sps:$4 sm:$0xff]  }
  0x94   :  { %1343 = vmatpush1.bf16.msra.mxu0 %v2576_v19  ;;  %v2668_v19 = vld [vmem:[#allocation5 + $0x424] ss:$16 sps:$4 sm:$0xff]  }
  0x95   :  { %1505 = vmatpush1.bf16.msra.mxu1 %v2579_v20  ;;  %1344 = vmatprep.subr.bf16.mxu0 %v2584_v21  ;;  %v2671_v20 = vld [vmem:[#allocation5 + $0x40c] ss:$16 sps:$4 sm:$0xff]   ;;  %v86_v21 = vld [vmem:[#allocation2 + $0x28] sm:$0xff] }
  0x96   :  { %1506 = vmatprep.subr.bf16.mxu1 %v2587_v22  ;;  %v93_v22 = vpack.c.bf16 %v86_v21, %v86_v21  ;;  %v2762_v21 = vld [vmem:[#allocation7 + $0x40] sm:$0xff]  }
  0x98   :  { %1345 = vmatpush1.bf16.msra.mxu0 %v2582_v23  ;;  %v2666_v23 = vld [vmem:[#allocation5 + $0x420] ss:$16 sps:$4 sm:$0xff]  }
  0x99   :  { %1507 = vmatpush1.bf16.msra.mxu1 %v2585_v24  ;;  %1346 = vmatprep.subr.bf16.mxu0 %v2590_v25  ;;  %v2669_v24 = vld [vmem:[#allocation5 + $0x408] ss:$16 sps:$4 sm:$0xff]   ;;  %v2674_v25 = vld [vmem:[#allocation5 + $0x444] ss:$16 sps:$4 sm:$0xff]  }
  0x9a   :  { %1508 = vmatprep.subr.bf16.mxu1 %v2593_v26  ;;  %v2677_v26 = vld [vmem:[#allocation5 + $0x42c] ss:$16 sps:$4 sm:$0xff]  }
  0x9c   :  { %1347 = vmatpush1.bf16.msra.mxu0 %v2588_v27  ;;  %v2672_v27 = vld [vmem:[#allocation5 + $0x440] ss:$16 sps:$4 sm:$0xff]  }
  0x9d   :  { %1509 = vmatpush1.bf16.msra.mxu1 %v2591_v28  ;;  %1348 = vmatprep.subr.bf16.mxu0 %v2596_v29  ;;  %v2675_v28 = vld [vmem:[#allocation5 + $0x428] ss:$16 sps:$4 sm:$0xff]   ;;  %v2680_v29 = vld [vmem:[#allocation5 + $0x464] ss:$16 sps:$4 sm:$0xff]  }
  0x9e   :  { %1510 = vmatprep.subr.bf16.mxu1 %v2599_v30  ;;  %v2683_v30 = vld [vmem:[#allocation5 + $0x44c] ss:$16 sps:$4 sm:$0xff]  }
  0xa0   :  { %1349 = vmatpush1.bf16.msra.mxu0 %v2594_v31  ;;  %v2678_v31 = vld [vmem:[#allocation5 + $0x460] ss:$16 sps:$4 sm:$0xff]  }
  0xa1   :  { %1511 = vmatpush1.bf16.msra.mxu1 %v2597_v32  ;;  %1350 = vmatprep.subr.bf16.mxu0 %v2602_v33  ;;  %v2681_v32 = vld [vmem:[#allocation5 + $0x448] ss:$16 sps:$4 sm:$0xff]   ;;  %v2686_v33 = vld [vmem:[#allocation5 + $0x484] ss:$16 sps:$4 sm:$0xff]  }
  0xa2   :  { %1512 = vmatprep.subr.bf16.mxu1 %v2605_v34  ;;  %v2689_v34 = vld [vmem:[#allocation5 + $0x46c] ss:$16 sps:$4 sm:$0xff]  }
  0xa4   :  { %1351 = vmatpush1.bf16.msra.mxu0 %v2600_v36  ;;  %v2687_v36 = vld [vmem:[#allocation5 + $0x468] ss:$16 sps:$4 sm:$0xff]  }
  0xa5   :  { %1513 = vmatpush1.bf16.msra.mxu1 %v2603_v38  ;;  %1352 = vmatprep.subr.bf16.mxu0 %v2608_v39  ;;  %v2695_v38 = vld [vmem:[#allocation5 + $0x48c] ss:$16 sps:$4 sm:$0xff]   ;;  %v2690_v39 = vld [vmem:[#allocation5 + $0x4a0] ss:$16 sps:$4 sm:$0xff]  }
  0xa6   :  { %1514 = vmatprep.subr.bf16.mxu1 %v2611_v40  ;;  %v2693_v40 = vld [vmem:[#allocation5 + $0x488] ss:$16 sps:$4 sm:$0xff]  }
  0xa8   :  { %1353 = vmatpush1.bf16.msra.mxu0 %v2606_v41  ;;  %v2698_v41 = vld [vmem:[#allocation5 + $0x4c4] ss:$16 sps:$4 sm:$0xff]  }
  0xa9   :  { %1515 = vmatpush1.bf16.msra.mxu1 %v2609_v42  ;;  %1354 = vmatprep.subr.bf16.mxu0 %v2614_v43  ;;  %v2701_v42 = vld [vmem:[#allocation5 + $0x4ac] ss:$16 sps:$4 sm:$0xff]   ;;  %v2696_v43 = vld [vmem:[#allocation5 + $0x4c0] ss:$16 sps:$4 sm:$0xff]  }
  0xaa   :  { %1516 = vmatprep.subr.bf16.mxu1 %v2617_v44  ;;  %v2699_v44 = vld [vmem:[#allocation5 + $0x4a8] ss:$16 sps:$4 sm:$0xff]  }
  0xac   :  { %1355 = vmatpush1.bf16.msra.mxu0 %v2612_v45  ;;  %v2704_v45 = vld [vmem:[#allocation5 + $0x4e4] ss:$16 sps:$4 sm:$0xff]  }
  0xad   :  { %1517 = vmatpush1.bf16.msra.mxu1 %v2615_v46  ;;  %1356 = vmatprep.subr.bf16.mxu0 %v2620_v47  ;;  %v2707_v46 = vld [vmem:[#allocation5 + $0x4cc] ss:$16 sps:$4 sm:$0xff]   ;;  %v2702_v47 = vld [vmem:[#allocation5 + $0x4e0] ss:$16 sps:$4 sm:$0xff]  }
  0xae   :  { %1518 = vmatprep.subr.bf16.mxu1 %v2623_v48  ;;  %v2705_v48 = vld [vmem:[#allocation5 + $0x4c8] ss:$16 sps:$4 sm:$0xff]  }
  0xb0   :  { %1357 = vmatpush1.bf16.msra.mxu0 %v2618_v49  ;;  %v2710_v49 = vld [vmem:[#allocation5 + $0x504] ss:$16 sps:$4 sm:$0xff]  }
  0xb1   :  { %1519 = vmatpush1.bf16.msra.mxu1 %v2621_v50  ;;  %1358 = vmatprep.subr.bf16.mxu0 %v2626_v51  ;;  %v2713_v50 = vld [vmem:[#allocation5 + $0x4ec] ss:$16 sps:$4 sm:$0xff]   ;;  %v2708_v51 = vld [vmem:[#allocation5 + $0x500] ss:$16 sps:$4 sm:$0xff]  }
  0xb2   :  { %1520 = vmatprep.subr.bf16.mxu1 %v2629_v52  ;;  %v2711_v52 = vld [vmem:[#allocation5 + $0x4e8] ss:$16 sps:$4 sm:$0xff]  }
  0xb4   :  { %1359 = vmatpush1.bf16.msra.mxu0 %v2624_v53  ;;  %v2716_v53 = vld [vmem:[#allocation5 + $0x524] ss:$16 sps:$4 sm:$0xff]  }
  0xb5   :  { %1521 = vmatpush1.bf16.msra.mxu1 %v2627_v54  ;;  %1360 = vmatprep.subr.bf16.mxu0 %v2632_v55  ;;  %v2719_v54 = vld [vmem:[#allocation5 + $0x50c] ss:$16 sps:$4 sm:$0xff]   ;;  %v2714_v55 = vld [vmem:[#allocation5 + $0x520] ss:$16 sps:$4 sm:$0xff]  }
  0xb6   :  { %1522 = vmatprep.subr.bf16.mxu1 %v2635_v56  ;;  %v2717_v56 = vld [vmem:[#allocation5 + $0x508] ss:$16 sps:$4 sm:$0xff]  }
  0xb8   :  { %1361 = vmatpush1.bf16.msra.mxu0 %v2630_v57  ;;  %v2722_v57 = vld [vmem:[#allocation5 + $0x544] ss:$16 sps:$4 sm:$0xff]  }
  0xb9   :  { %1523 = vmatpush1.bf16.msra.mxu1 %v2633_v58  ;;  %1362 = vmatprep.subr.bf16.mxu0 %v2638_v59  ;;  %v2725_v58 = vld [vmem:[#allocation5 + $0x52c] ss:$16 sps:$4 sm:$0xff]   ;;  %v2720_v59 = vld [vmem:[#allocation5 + $0x540] ss:$16 sps:$4 sm:$0xff]  }
  0xba   :  { %1524 = vmatprep.subr.bf16.mxu1 %v2641_v60  ;;  %v2723_v60 = vld [vmem:[#allocation5 + $0x528] ss:$16 sps:$4 sm:$0xff]  }
  0xbc   :  { %1363 = vmatpush1.bf16.msra.mxu0 %v2636_v61  ;;  %v2728_v61 = vld [vmem:[#allocation5 + $0x564] ss:$16 sps:$4 sm:$0xff]  }
  0xbd   :  { %1525 = vmatpush1.bf16.msra.mxu1 %v2639_v62  ;;  %1364 = vmatprep.subr.bf16.mxu0 %v2644_v63  ;;  %v2731_v62 = vld [vmem:[#allocation5 + $0x54c] ss:$16 sps:$4 sm:$0xff]   ;;  %v2726_v63 = vld [vmem:[#allocation5 + $0x560] ss:$16 sps:$4 sm:$0xff]  }
  0xbe   :  { %1526 = vmatprep.subr.bf16.mxu1 %v2647_v1  ;;  %v2729_v1 = vld [vmem:[#allocation5 + $0x548] ss:$16 sps:$4 sm:$0xff]  }
  0xc0   :  { %1365 = vmatpush1.bf16.msra.mxu0 %v2642_v2  ;;  %v2734_v2 = vld [vmem:[#allocation5 + $0x584] ss:$16 sps:$4 sm:$0xff]  }
  0xc1   :  { %1527 = vmatpush1.bf16.msra.mxu1 %v2645_v3  ;;  %1366 = vmatprep.subr.bf16.mxu0 %v2650_v4  ;;  %v2737_v3 = vld [vmem:[#allocation5 + $0x56c] ss:$16 sps:$4 sm:$0xff]   ;;  %v2732_v4 = vld [vmem:[#allocation5 + $0x580] ss:$16 sps:$4 sm:$0xff]  }
  0xc2   :  { %1528 = vmatprep.subr.bf16.mxu1 %v2653_v5  ;;  %v2735_v5 = vld [vmem:[#allocation5 + $0x568] ss:$16 sps:$4 sm:$0xff]  }
  0xc4   :  { %1367 = vmatpush1.bf16.msra.mxu0 %v2648_v6  ;;  %v2740_v6 = vld [vmem:[#allocation5 + $0x5a4] ss:$16 sps:$4 sm:$0xff]  }
  0xc5   :  { %1529 = vmatpush1.bf16.msra.mxu1 %v2651_v8  ;;  %1368 = vmatprep.subr.bf16.mxu0 %v2656_v9  ;;  %v2743_v8 = vld [vmem:[#allocation5 + $0x58c] ss:$16 sps:$4 sm:$0xff]   ;;  %v2738_v9 = vld [vmem:[#allocation5 + $0x5a0] ss:$16 sps:$4 sm:$0xff]  }
  0xc6   :  { %1530 = vmatprep.subr.bf16.mxu1 %v2659_v10  ;;  %v2741_v10 = vld [vmem:[#allocation5 + $0x588] ss:$16 sps:$4 sm:$0xff]  }
  0xc8   :  { %1369 = vmatpush1.bf16.msra.mxu0 %v2654_v11  ;;  %v2746_v11 = vld [vmem:[#allocation5 + $0x5c4] ss:$16 sps:$4 sm:$0xff]  }
  0xc9   :  { %1531 = vmatpush1.bf16.msra.mxu1 %v2657_v12  ;;  %1379 = vmatprep.subr.bf16.mxu0 %v2662_v14  ;;  %v2749_v12 = vld [vmem:[#allocation5 + $0x5ac] ss:$16 sps:$4 sm:$0xff]   ;;  %v2747_v14 = vld [vmem:[#allocation5 + $0x5a8] ss:$16 sps:$4 sm:$0xff]  }
  0xca   :  { %1532 = vmatprep.subr.bf16.mxu1 %v2665_v15  ;;  %v2752_v15 = vld [vmem:[#allocation5 + $0x5e4] ss:$16 sps:$4 sm:$0xff]  }
  0xcb   :  { %1371 = vmatmul.mubr.bf16.vlgmr.msra.gmra.mrb[0].mxu0 %v90_v17 }
  0xcc   :  { %1380 = vmatpush1.bf16.msra.mxu0 %v2660_v16  ;;  %1411 = vmatprep.mubr.bf16.mxu0 %v93_v22  ;;  %v2755_v16 = vld [vmem:[#allocation5 + $0x5cc] ss:$16 sps:$4 sm:$0xff]  }
  0xcd   :  { %1533 = vmatpush1.bf16.msra.mxu1 %v2663_v18  ;;  %1381 = vmatprep.subr.bf16.mxu0 %v2668_v19  ;;  %v2753_v18 = vld [vmem:[#allocation5 + $0x5c8] ss:$16 sps:$4 sm:$0xff]  }
  0xce   :  { %1543 = vmatprep.subr.bf16.mxu1 %v2671_v20  ;;  %v85_v19 = vld [vmem:[#allocation2 + $0x20] sm:$0xff] }
  0xcf   :  { %v2758_v20 = vld [vmem:[#allocation5 + $0x5ec] ss:$16 sps:$4 sm:$0xff]  }
  0xd0   :  { %1535 = vmatmul.mubr.bf16.vlgmr.msra.gmra.mrb[4].mxu1 %v90_v17  ;;  %1382 = vmatpush1.bf16.msra.mxu0 %v2666_v23  ;;  %v2750_v17 = vld [vmem:[#allocation5 + $0x5e0] ss:$16 sps:$4 sm:$0xff]   ;;  %v2756_v23 = vld [vmem:[#allocation5 + $0x5e8] ss:$16 sps:$4 sm:$0xff]  }
  0xd1   :  { %1544 = vmatpush1.bf16.msra.mxu1 %v2669_v24  ;;  %1383 = vmatprep.subr.bf16.mxu0 %v2674_v25  ;;  %v2763_v24 = vld [vmem:[#allocation7] sm:$0xff]   ;;  %v2761_v25 = vld [vmem:[#allocation5 + $0x60c] ss:$16 sps:$4 sm:$0xff]  }
  0xd2   :  { %1545 = vmatprep.subr.bf16.mxu1 %v2677_v26  ;;  %1575 = vmatprep.mubr.bf16.mxu1 %v93_v22  ;;  %v92_v22 = vpack.c.bf16 %v85_v19, %v85_v19  ;;  %v2764_v26 = vld [vmem:[#allocation7 + $0x48] sm:$0xff]  }
  0xd4   :  { %1384 = vmatpush1.bf16.msra.mxu0 %v2672_v27  ;;  %v2759_v27 = vld [vmem:[#allocation5 + $0x608] ss:$16 sps:$4 sm:$0xff]  }
  0xd5   :  { %1546 = vmatpush1.bf16.msra.mxu1 %v2675_v28  ;;  %1385 = vmatprep.subr.bf16.mxu0 %v2680_v29  ;;  %v2765_v28 = vld [vmem:[#allocation7 + $0x8] sm:$0xff]   ;;  %v2770_v29 = vld [vmem:[#allocation7 + $0xc0] sm:$0xff]  }
  0xd6   :  { %1547 = vmatprep.subr.bf16.mxu1 %v2683_v30  ;;  %v2766_v30 = vld [vmem:[#allocation7 + $0x50] sm:$0xff]  }
  0xd8   :  { %1386 = vmatpush1.bf16.msra.mxu0 %v2678_v31  ;;  %v2767_v31 = vld [vmem:[#allocation7 + $0x10] sm:$0xff]  }
  0xd9   :  { %1548 = vmatpush1.bf16.msra.mxu1 %v2681_v32  ;;  %1387 = vmatprep.subr.bf16.mxu0 %v2686_v33  ;;  %v2768_v32 = vld [vmem:[#allocation7 + $0x58] sm:$0xff]  }
  0xda   :  { %1549 = vmatprep.subr.bf16.mxu1 %v2689_v34  ;;  %v2769_v33 = vld [vmem:[#allocation7 + $0x18] sm:$0xff]   ;;  %v2772_v34 = vld [vmem:[#allocation7 + $0x60] sm:$0xff]  }
  0xdc   :  { %1388 = vmatpush1.bf16.msra.mxu0 %v2684_v35  ;;  %v2771_v35 = vld [vmem:[#allocation7 + $0x80] sm:$0xff]  }
  0xdd   :  { %1550 = vmatpush1.bf16.msra.mxu1 %v2687_v36  ;;  %1389 = vmatprep.subr.bf16.mxu0 %v2692_v37  ;;  %v2773_v36 = vld [vmem:[#allocation7 + $0x20] sm:$0xff]   ;;  %v2774_v37 = vld [vmem:[#allocation7 + $0xc8] sm:$0xff]  }
  0xde   :  { %1551 = vmatprep.subr.bf16.mxu1 %v2695_v38  ;;  %v2776_v38 = vld [vmem:[#allocation7 + $0x68] sm:$0xff]  }
  0xe0   :  { %1390 = vmatpush1.bf16.msra.mxu0 %v2690_v39 }
  0xe1   :  { %1552 = vmatpush1.bf16.msra.mxu1 %v2693_v40  ;;  %1391 = vmatprep.subr.bf16.mxu0 %v2698_v41 }
  0xe2   :  { %1553 = vmatprep.subr.bf16.mxu1 %v2701_v42 }
  0xe4   :  { %1392 = vmatpush1.bf16.msra.mxu0 %v2696_v43  ;;  %v2777_v43 = vld [vmem:[#allocation7 + $0x28] sm:$0xff]  }
  0xe5   :  { %1554 = vmatpush1.bf16.msra.mxu1 %v2699_v44  ;;  %1393 = vmatprep.subr.bf16.mxu0 %v2704_v45  ;;  %v2778_v44 = vld [vmem:[#allocation7 + $0xd0] sm:$0xff]  }
  0xe6   :  { %1555 = vmatprep.subr.bf16.mxu1 %v2707_v46  ;;  %v2779_v45 = vld [vmem:[#allocation7 + $0x90] sm:$0xff]  }
  0xe7   :  { %v2780_v46 = vld [vmem:[#allocation7 + $0x70] sm:$0xff]  }
  0xe8   :  { %1394 = vmatpush1.bf16.msra.mxu0 %v2702_v47  ;;  %v2781_v47 = vld [vmem:[#allocation7 + $0x30] sm:$0xff]  }
  0xe9   :  { %1556 = vmatpush1.bf16.msra.mxu1 %v2705_v48  ;;  %1395 = vmatprep.subr.bf16.mxu0 %v2710_v49  ;;  %v2783_v48 = vld [vmem:[#allocation7 + $0x98] sm:$0xff]  }
  0xea   :  { %1557 = vmatprep.subr.bf16.mxu1 %v2713_v50  ;;  %v2784_v49 = vld [vmem:[#allocation7 + $0x78] sm:$0xff]  }
  0xeb   :  { %v2785_v50 = vld [vmem:[#allocation7 + $0x38] sm:$0xff]  }
  0xec   :  { %1396 = vmatpush1.bf16.msra.mxu0 %v2708_v51  ;;  %v2786_v51 = vld [vmem:[#allocation7 + $0xe0] sm:$0xff]  }
  0xed   :  { %1558 = vmatpush1.bf16.msra.mxu1 %v2711_v52  ;;  %1397 = vmatprep.subr.bf16.mxu0 %v2716_v53  ;;  %v2787_v52 = vld [vmem:[#allocation7 + $0xa0] sm:$0xff]   ;;  %v2788_v53 = vld [vmem:[#allocation7 + $0xe8] sm:$0xff]  }
  0xee   :  { %1559 = vmatprep.subr.bf16.mxu1 %v2719_v54  ;;  %v2789_v54 = vld [vmem:[#allocation7 + $0xa8] sm:$0xff]  }
  0xf0   :  { %1398 = vmatpush1.bf16.msra.mxu0 %v2714_v55  ;;  %v2790_v55 = vld [vmem:[#allocation7 + $0xf0] sm:$0xff]  }
  0xf1   :  { %1560 = vmatpush1.bf16.msra.mxu1 %v2717_v56  ;;  %1399 = vmatprep.subr.bf16.mxu0 %v2722_v57  ;;  %v2791_v56 = vld [vmem:[#allocation7 + $0xb0] sm:$0xff]   ;;  %v2792_v57 = vld [vmem:[#allocation7 + $0xf8] sm:$0xff]  }
  0xf2   :  { %1561 = vmatprep.subr.bf16.mxu1 %v2725_v58  ;;  %v2793_v58 = vld [vmem:[#allocation7 + $0xb8] sm:$0xff]  }
  0xf4   :  { %1400 = vmatpush1.bf16.msra.mxu0 %v2720_v59  ;;  %v2933_v59 = vmov 0.0  }
  0xf5   :  { %1562 = vmatpush1.bf16.msra.mxu1 %v2723_v60  ;;  %1401 = vmatprep.subr.bf16.mxu0 %v2728_v61  ;;  %v293_v60 = vlaneseq }
  0xf6   :  { %1563 = vmatprep.subr.bf16.mxu1 %v2731_v62 }
  0xf7   :  { %v294_v61 = vshrl.u32 %v293_v60, 7 }
  0xf8   :  { %1402 = vmatpush1.bf16.msra.mxu0 %v2726_v63  ;;  %v291_v63 = vld [vmem:[%s3064_s2] sm:$0xf] }
  0xf9   :  { %1564 = vmatpush1.bf16.msra.mxu1 %v2729_v1  ;;  %1403 = vmatprep.subr.bf16.mxu0 %v2734_v2  ;;  %v295_v62 = vsub.s32 0, %v294_v61  ;;  %v299_v1 = vsub.s32 1, %v294_v61  ;;  %v307_v19 = vsub.s32 3, %v294_v61 }
  0xfa   :  { %1565 = vmatprep.subr.bf16.mxu1 %v2737_v3 }
  0xfb   :  { %v296_v2 = vrot.slane %v291_v63, %v295_v62  ;;  %v300_v3 = vrot.slane %v291_v63, %v299_v1 }
  0xfc   :  { %1404 = vmatpush1.bf16.msra.mxu0 %v2732_v4 }
  0xfd   :  { %1566 = vmatpush1.bf16.msra.mxu1 %v2735_v5  ;;  %1405 = vmatprep.subr.bf16.mxu0 %v2740_v6 }
  0xfe   :  { %1567 = vmatprep.subr.bf16.mxu1 %v2743_v8 }
 0x100   :  { %1406 = vmatpush1.bf16.msra.mxu0 %v2738_v9 }
 0x101   :  { %1568 = vmatpush1.bf16.msra.mxu1 %v2741_v10  ;;  %1407 = vmatprep.subr.bf16.mxu0 %v2746_v11 }
 0x102   :  { %1569 = vmatprep.subr.bf16.mxu1 %v2749_v12 }
 0x104   :  { %1408 = vmatpush1.bf16.msra.mxu0 %v2744_v13 }
 0x105   :  { %1570 = vmatpush1.bf16.msra.mxu1 %v2747_v14  ;;  %1409 = vmatprep.subr.bf16.mxu0 %v2752_v15 }
 0x106   :  { %1571 = vmatprep.subr.bf16.mxu1 %v2755_v16  ;;  %v2794_v16 = vld [vmem:[#allocation8] sm:$0xff]  }
 0x108   :  { %1410 = vmatpush1.bf16.msra.mxu0 %v2750_v17 }
 0x109   :  { %1572 = vmatpush1.bf16.msra.mxu1 %v2753_v18  ;;  %2357 = vmatprep.subr.bf16.mxu0 %v2762_v21  ;;  %v303_v18 = vsub.s32 2, %v294_v61 }
 0x10a   :  { %1573 = vmatprep.subr.bf16.mxu1 %v2758_v20  ;;  %v2795_v20 = vld [vmem:[#allocation8 + $0x8] sm:$0xff]  }
 0x10b   :  { %1412 = vmatmul.mubr.bf16.vlgmr.msra.gmra.mrb[0].mxu0 %v92_v22  ;;  %v304_v21 = vrot.slane %v291_v63, %v303_v18 }
 0x10c   :  { %2358 = vmatpush3.bf16.msra.mxu0 %v2763_v24 }
 0x10d   :  { %1574 = vmatpush1.bf16.msra.mxu1 %v2756_v23  ;;  %2359 = vmatprep.subr.bf16.mxu0 %v2764_v26 }
 0x10e   :  { %1584 = vmatprep.subr.bf16.mxu1 %v2761_v25 }
 0x110   :  { %1576 = vmatmul.mubr.bf16.vlgmr.msra.gmra.mrb[4].mxu1 %v92_v22  ;;  %2360 = vmatpush3.bf16.msra.mxu0 %v2765_v28  ;;  %v308_v22 = vrot.slane %v291_v63, %v307_v19 }
 0x111   :  { %1585 = vmatpush1.bf16.msra.mxu1 %v2759_v27  ;;  %1616 = vmatprep.mubr.bf16.mxu1 %v2932_v0  ;;  %v2775_v0 = vld [vmem:[#allocation7 + $0x88] sm:$0xff]  }
 0x112   :  { %2379 = vmatprep.subr.bf16.mxu1 %v2770_v29  ;;  %2361 = vmatprep.subr.bf16.mxu0 %v2766_v30 }
 0x114   :  { %2362 = vmatpush3.bf16.msra.mxu0 %v2767_v31 }
 0x115   :  { %2363 = vmatprep.subr.bf16.mxu0 %v2768_v32 }
 0x118   :  { %2364 = vmatpush3.bf16.msra.mxu0 %v2769_v33  ;;  %v2796_v33 = vld [vmem:[#allocation8 + $0x10] sm:$0xff]  }
 0x119   :  { %2365 = vmatprep.subr.bf16.mxu0 %v2772_v34  ;;  %v2797_v34 = vld [vmem:[#allocation8 + $0x18] sm:$0xff]  }
 0x11c   :  { %2314 = vmatmul.mubr.msk.bf16.vlgmr.msra.gmra.mrb[4].mxu1 %vm1293_vm0, %v3025_v7  ;;  %2366 = vmatpush3.bf16.msra.mxu0 %v2773_v36  ;;  %v2782_v7 = vld [vmem:[#allocation7 + $0xd8] sm:$0xff]   ;;  %v2799_v36 = vld [vmem:[#allocation8 + $0x28] sm:$0xff]  }
 0x11d   :  { %2380 = vmatpush3.bf16.msra.mxu1 %v2771_v35  ;;  %2367 = vmatprep.subr.bf16.mxu0 %v2776_v38  ;;  %v2798_v35 = vld [vmem:[#allocation8 + $0x20] sm:$0xff]   ;;  %v2801_v38 = vld [vmem:[#allocation8 + $0x38] sm:$0xff]  }
 0x11e   :  { %2381 = vmatprep.subr.bf16.mxu1 %v2774_v37  ;;  %v2800_v37 = vld [vmem:[#allocation8 + $0x30] sm:$0xff]  }
 0x120   :  { %2368 = vmatpush3.bf16.msra.mxu0 %v2777_v43  ;;  %v2315_v43 = vld [vmem:[%s3066_s4] ss:$0 sm:$0xff]  ;;  %s2935_s4 = smov [#allocation10]  }
 0x121   :  { %2382 = vmatpush3.bf16.msra.mxu1 %v2775_v0  ;;  %2369 = vmatprep.subr.bf16.mxu0 %v2780_v46  ;;  %s2106_s30 = sshll.u32 %s2935_s4, 4  ;;  %s2107_s30 = int_to_ptr.vmem [resolvable:$true] %s2106_s30 }
 0x122   :  { %2383 = vmatprep.subr.bf16.mxu1 %v2778_v44  ;;  %p2899_p5 = scmp.lt.s32.totalorder %s2107_s30, %s2107_s30 }
 0x123   :  { %v1454_v39 = vpop.f32.mrb[0].mxu1 }
 0x124   :  { %v1456_v40 = vpop.f32.mrb[1].mxu1  ;;  %2370 = vmatpush3.bf16.msra.mxu0 %v2781_v47 }
 0x125   :  { %v1458_v41 = vpop.f32.mrb[2].mxu1  ;;  %2384 = vmatpush3.bf16.msra.mxu1 %v2779_v45  ;;  %2371 = vmatprep.subr.bf16.mxu0 %v2784_v49 }
 0x126   :  { %v1459_v42 = vpop.f32.mrb[3].mxu1  ;;  %2385 = vmatprep.subr.bf16.mxu1 %v2782_v7 }
 0x128   :  { %2372 = vmatpush3.bf16.msra.mxu0 %v2785_v50 }
 0x129   :  { %2386 = vmatpush3.bf16.msra.mxu1 %v2783_v48  ;;  %2410 = vmatprep.subr.bf16.mxu0 %v2933_v59 }
 0x12a   :  { %2387 = vmatprep.subr.bf16.mxu1 %v2786_v51 }
 0x12d   :  { %2388 = vmatpush3.bf16.msra.mxu1 %v2787_v52  ;;  %v2348_v52 = vld [vmem:[%s3068_s6] ss:$0 sm:$0xff]  ;;  %s2894_s6 = scalar_lea.vmem %s2107_s30, 128 }
 0x12e   :  { %2389 = vmatprep.subr.bf16.mxu1 %v2788_v53  ;;  %p2895_p4 = scmp.ne.s32.totalorder %s2107_s30, %s2894_s6  ;;  %p2900_p6 = scmp.lt.s32.totalorder %s2894_s6, %s2894_s6 }
 0x130   :  { %p2901_p7 = por %p2900_p6, %p2899_p5 }
 0x131   :  { %2390 = vmatpush3.bf16.msra.mxu1 %v2789_v54 }
 0x132   :  { %2391 = vmatprep.subr.bf16.mxu1 %v2790_v55  ;;  %p2902_p8 = pnand %p2901_p7, %p2895_p4 }
 0x135   :  { %2392 = vmatpush3.bf16.msra.mxu1 %v2791_v56 }
 0x136   :  { %2393 = vmatprep.subr.bf16.mxu1 %v2792_v57 }
 0x139   :  { %2394 = vmatpush3.bf16.msra.mxu1 %v2793_v58 }
 0x1de   :  { %v1413_v4 = vpop.f32.mrb[0].mxu0 }
 0x1df   :  { %v2430_v5 = vadd.f32 %v1413_v4, %v296_v2  ;;  %v1415_v6 = vpop.f32.mrb[1].mxu0 }
 0x1e0   :  { %v2432_v8 = vadd.f32 %v1415_v6, %v300_v3  ;;  %v1417_v9 = vpop.f32.mrb[2].mxu0 }
 0x1e1   :  { %v2431_v10 = vadd.f32 %v2430_v5, %v1454_v39  ;;  %v1418_v11 = vpop.f32.mrb[3].mxu0 }
 0x1e2   :  { %v2433_v12 = vadd.f32 %v2432_v8, %v1456_v40 }
 0x1e3   :  { %v1625_v13 = vmax.f32 %v2431_v10, 0.0 }
 0x1e4   :  { %v1626_v14 = vmax.f32 %v2433_v12, 0.0 }
 0x1e5   :  { %v1629_v17 = vpack.c.bf16 %v1625_v13, %v1625_v13 }
 0x1e6   :  { %v1630_v15 = vpack.c.bf16 %v1626_v14, %v1626_v14 }
 0x1e8   :  { %1928 = vmatprep.mubr.bf16.mxu0 %v1630_v15 }
 0x1e9   :  { %1929 = vmatmul.mubr.bf16.vlgmr.msra.gmra.mrb[4].mxu0 %v1629_v17 }
 0x1ea   :  { %2411 = vmatpush3.bf16.msra.mxu0 %v2794_v16  ;;  %2426 = vmatprep.mubr.msk.bf16.mxu0 %vm2934_vm1, %v2933_v59 }
 0x1eb   :  { %2412 = vmatprep.subr.bf16.mxu0 %v2933_v59 }
 0x1ee   :  { %2413 = vmatpush3.bf16.msra.mxu0 %v2795_v20 }
 0x1ef   :  { %v1618_v23 = vpop.f32.mrb[4].mxu1  ;;  %2414 = vmatprep.subr.bf16.mxu0 %v2933_v59 }
 0x1f0   :  { %v2434_v24 = vadd.f32 %v1618_v23, %v304_v21  ;;  %v1620_v25 = vpop.f32.mrb[5].mxu1 }
 0x1f1   :  { %v2435_v26 = vadd.f32 %v1620_v25, %v308_v22  ;;  %v1622_v27 = vpop.f32.mrb[6].mxu1 }
 0x1f2   :  { %v1627_v28 = vmax.f32 %v2434_v24, 0.0  ;;  %v1623_v29 = vpop.f32.mrb[7].mxu1  ;;  %2415 = vmatpush3.bf16.msra.mxu0 %v2796_v33 }
 0x1f3   :  { %v1628_v30 = vmax.f32 %v2435_v26, 0.0  ;;  %2416 = vmatprep.subr.bf16.mxu0 %v2933_v59 }
 0x1f4   :  { %v1631_v32 = vpack.c.bf16 %v1627_v28, %v1627_v28 }
 0x1f5   :  { %v1632_v31 = vpack.c.bf16 %v1628_v30, %v1628_v30 }
 0x1f6   :  { %2417 = vmatpush3.bf16.msra.mxu0 %v2797_v34 }
 0x1f7   :  { %1968 = vmatprep.mubr.bf16.mxu1 %v1632_v31  ;;  %2418 = vmatprep.subr.bf16.mxu0 %v2933_v59 }
 0x1f8   :  { %1969 = vmatmul.mubr.bf16.vlgmr.msra.gmra.mrb[8].mxu1 %v1631_v32 }
 0x1fa   :  { %2419 = vmatpush3.bf16.msra.mxu0 %v2798_v35 }
 0x1fb   :  { %2420 = vmatprep.subr.bf16.mxu0 %v2933_v59 }
 0x1fe   :  { %2421 = vmatpush3.bf16.msra.mxu0 %v2799_v36 }
 0x1ff   :  { %2422 = vmatprep.subr.bf16.mxu0 %v2933_v59 }
 0x202   :  { %2423 = vmatpush3.bf16.msra.mxu0 %v2800_v37 }
 0x203   :  { %2424 = vmatprep.subr.bf16.mxu0 %v2933_v59 }
 0x206   :  { %2425 = vmatpush3.bf16.msra.mxu0 %v2801_v38 }
 0x2bc   :  { %v2373_v0 = vpop.f32.mrb[4].mxu0 }
 0x2bd   :  { %v2374_v39 = vpop.f32.mrb[5].mxu0 }
 0x2be   :  { %v2375_v40 = vadd.f32 %v2374_v39, %v2373_v0  ;;  %v2376_v41 = vpop.f32.mrb[6].mxu0 }
 0x2bf   :  { %v2377_v42 = vpop.f32.mrb[7].mxu0 }
 0x2c0   :  { %v1931_v46 = vadd.f32 %v2375_v40, %v2315_v43 }
 0x2cb   :  { %v2395_v44 = vpop.f32.mrb[8].mxu1 }
 0x2cc   :  { %v2396_v45 = vpop.f32.mrb[9].mxu1 }
 0x2cd   :  { %v2397_v47 = vadd.f32 %v2396_v45, %v2395_v44  ;;  %v2398_v7 = vpop.f32.mrb[10].mxu1 }
 0x2ce   :  { %v2399_v48 = vpop.f32.mrb[11].mxu1 }
 0x2cf   :  { %v1971_v49 = vadd.f32 %v2397_v47, %v1931_v46 }
 0x2d1   :  { %v1976_v50 = vmax.f32 %v1971_v49, 0.0 }
 0x2d3   :  { %v1977_v51 = vpack.c.bf16 %v1976_v50, %v1976_v50 }
 0x2d5   :  { %2427 = vmatmul.mubr.bf16.vlgmr.msra.gmra.mrb[8].mxu0 %v1977_v51 }
 0x3a8   :  { %v2083_v53 = vpop.f32.mrb[8].mxu0 }
 0x3a9   :  { %v2084_v54 = vadd.f32 %v2348_v52, %v2083_v53  ;;  %v2428_v55 = vpop.f32.mrb[9].mxu0 }
 0x3aa   :  { %v2086_v56 = vpop.f32.mrb[10].mxu0 }
 0x3ab   :  { %2089 = vmax.xlane.f32.xlu0 %v2084_v54  ;;  %v2429_v57 = vpop.f32.mrb[11].mxu0 }
 0x438   :  { %v2090_v58 = vpop.xlane.xlu0 %2089 }
 0x439   :  { %v2091_v59 = vsub.f32 %v2084_v54, %v2090_v58 }
 0x43b   :  { %v2092_v60 = vmul.f32 1.442695, %v2091_v59 }
 0x43d   :  { %2802 = vpow2.f32 %v2092_v60 }
 0x447   :  { %v2803_v61 = vpop.eup %2802 }
 0x448   :  { %2094 = vadd.xlane.f32.xlu0 %v2803_v61 }
 0x4d5   :  { %v2095_v62 = vpop.xlane.xlu0 %2094 }
 0x4d6   :  { %2804 = vlog2.f32 %v2095_v62 }
 0x4e0   :  { %v2805_v63 = vpop.eup %2804 }
 0x4e1   :  { %v2097_v1 = vmul.f32 0.6931472, %v2805_v63 }
 0x4e3   :  { %v2098_v2 = vsub.f32 %v2091_v59, %v2097_v1 }
 0x4e5   :  { %2099 = vst [vmem:[#allocation10] sm:$0xff] %v2098_v2 }
 0x4e6   :  { %2905 = shalt.err (!%p2902_p8)
}
 0x4e7   :  { %s2906_s10 = scalar_lea.hbm %s3069_s7, 128 }
 0x4e8   :  { %p2907_p9 = scmp.ne.s32.totalorder %s3069_s7, %s2906_s10  ;;  %p2910_p10 = scmp.lt.u32.totalorder %s2906_s10, %s3069_s7 }
 0x4ea   :  { %p2912_p11 = pnand %p2910_p10, %p2907_p9 }
 0x4ec   :  { %2915 = shalt.err (!%p2912_p11)
}
 0x4ed   :  { %2109 = dma.vmem_to_hbm [thread:$0]  %s2107_s30, 128, %s3069_s7, [#allocation4]  }
 0x4ee   :  { %2922 = dma.done.wait [#allocation4], 128  }
 0x4ef   :  { %2923 = vsyncadd [#allocation4], 4294967168 }
 0x4f0   :  { %2113 = vsyncpa [#allocation3], 1 }
 0x4f1   :  { %2114 = vsyncpa [#allocation6], 1 }
 0x4f2   :  { %2115 = vsyncpa [#allocation9], 1 }
 0x4f3   :  { %2116 = vsyncpa [#allocation4], 1 }

</bundles_post_ra>
